<compile_context>
chip_gen: v6e
topology: v6e:2x2x1
jax: 0.10.0
libtpu: 0.0.40
codegen_flags: <defaults>
</compile_context>

<pallas_src>
import functools

import jax
import jax.numpy as jnp
from jax.experimental import pallas as pl
from jax.experimental.pallas import tpu as pltpu

EPS = 1e-5                      # nn.LayerNorm default eps
_INV_SQRT2 = 0.7071067811865476


def _layernorm_channels(h, gamma, beta):
    """LayerNorm over the channel (sublane) axis of an f32 [C, T] tile."""
    mu = jnp.mean(h, axis=0, keepdims=True)
    d = h - mu
    var = jnp.mean(d * d, axis=0, keepdims=True)
    return d * jax.lax.rsqrt(var + EPS) * gamma + beta


def _gelu_exact(h):
    # torch.nn.functional.gelu default: exact erf-based GELU.
    return 0.5 * h * (1.0 + jax.lax.erf(h * _INV_SQRT2))


def local_mlp_kernel(x_ref, w1_ref, w2_ref, w3_ref, vec_ref, o_ref, *, approx_gelu):
    x = x_ref[...]                           # [C, T], input dtype
    x32 = x.astype(jnp.float32)              # residual path, f32
    xb = x.astype(jnp.bfloat16)              # MXU feed

    vecs = vec_ref[...]                      # [C, 8] f32: b1 g1 be1 b2 g2 be2 b3 pad
    b1, g1, be1 = vecs[:, 0:1], vecs[:, 1:2], vecs[:, 2:3]
    b2, g2, be2 = vecs[:, 3:4], vecs[:, 4:5], vecs[:, 5:6]
    b3 = vecs[:, 6:7]

    # fc1 (1x1 conv): [C,C] @ [C,T] on the MXU, bf16 in / f32 accumulate.
    h = jnp.dot(w1_ref[...], xb, preferred_element_type=jnp.float32) + b1
    h = _layernorm_channels(h, g1, be1)
    if approx_gelu:
        # Optional (v6e) EUP-friendly tanh GELU; off by default for torch parity.
        h = jax.nn.gelu(h, approximate=True)
    else:
        h = _gelu_exact(h)
    # fc2
    h = jnp.dot(w2_ref[...], h.astype(jnp.bfloat16),
                preferred_element_type=jnp.float32) + b2
    h = _layernorm_channels(h, g2, be2)
    h = h + x32                              # residual add in f32
    # proj
    out = jnp.dot(w3_ref[...], h.astype(jnp.bfloat16),
                  preferred_element_type=jnp.float32) + b3
    o_ref[...] = out.astype(o_ref.dtype)


def _pick_lane_tile(hw, c):
    """Largest lane tile (multiple of 128) dividing H*W that fits the VMEM budget."""
    budget = 16 * 1024 * 1024
    for t in (2048, 1024, 512, 256, 128):
        if hw % t == 0 and 10 * c * t * 4 <= budget:
            return t
    return hw   # ragged / tiny spatial extents: one full-row tile per batch image


@functools.partial(jax.jit, static_argnames=("patch_size", "approx_gelu"))
def local_mlp(x, params, *, patch_size=2, approx_gelu=False):
    """x: [B, C, H, W] (NCHW, like the PyTorch module)."""
    B, C, H, W = x.shape
    assert H % patch_size == 0 and W % patch_size == 0, "H, W must divide patch_size"

    HW = H * W
    tm = _pick_lane_tile(HW, C)
    x3 = x.reshape(B, C, HW)                 # free reshape: NCHW already spatial-last

    w1, b1, g1, be1, w2, b2, g2, be2, w3, b3 = params
    # bf16 weights: MXU-native on v5e/v6e/v7x, half the VMEM + DMA bytes.
    w1b, w2b, w3b = (w.astype(jnp.bfloat16) for w in (w1, w2, w3))
    # Pack the per-channel vectors into a single [C, 8] f32 operand.
    vecs = jnp.stack([b1, g1, be1, b2, g2, be2, b3, jnp.zeros_like(b3)],
                     axis=1).astype(jnp.float32)

    grid = (B, HW // tm)

    x_spec = pl.BlockSpec((None, C, tm), lambda b, i: (b, 0, i))
    w_spec = pl.BlockSpec((C, C), lambda b, i: (0, 0))
    v_spec = pl.BlockSpec((C, 8), lambda b, i: (0, 0))

    # Explicit VMEM budget: v5e scoped default is only 16 MiB, v7x has 64 MiB
    # physical per TensorCore — size for double-buffered activations + weights.
    act = C * tm * 4
    est = 4 * act + 8 * act + 2 * (3 * C * C * 2 + C * 8 * 4)
    vmem_limit = int(min(max(2 * est, 32 * 1024 * 1024), 64 * 1024 * 1024))

    M = B * HW
    cost = pl.CostEstimate(
        flops=6 * M * C * C,                                   # 3 matmuls
        transcendentals=M * (C + 2),                           # erf + 2 rsqrt
        bytes_accessed=2 * M * C * x.dtype.itemsize + 3 * C * C * 2 + C * 8 * 4,
    )

    out3 = pl.pallas_call(
        functools.partial(local_mlp_kernel, approx_gelu=approx_gelu),
        out_shape=jax.ShapeDtypeStruct((B, C, HW), x.dtype),
        grid_spec=pltpu.PrefetchScalarGridSpec(
            num_scalar_prefetch=0,
            grid=grid,
            in_specs=[x_spec, w_spec, w_spec, w_spec, v_spec],
            out_specs=x_spec,
        ),
        compiler_params=pltpu.CompilerParams(
            dimension_semantics=("parallel", "parallel"),
            vmem_limit_bytes=vmem_limit),
        cost_estimate=cost,
    )(x3, w1b, w2b, w3b, vecs)

    return out3.reshape(B, C, H, W)


def init_params(key, dim):
    """Deterministic synthetic params matching PatchMLP(dim) shapes."""
    ks = jax.random.split(key, 6)
    scale = 1.0 / jnp.sqrt(dim)
    w1 = jax.random.uniform(ks[0], (dim, dim), jnp.float32, -scale, scale)  # fc1
    b1 = jax.random.uniform(ks[1], (dim,), jnp.float32, -scale, scale)
    w2 = jax.random.uniform(ks[2], (dim, dim), jnp.float32, -scale, scale)  # fc2
    b2 = jax.random.uniform(ks[3], (dim,), jnp.float32, -scale, scale)
    w3 = jax.random.uniform(ks[4], (dim, dim), jnp.float32, -scale, scale)  # proj
    b3 = jax.random.uniform(ks[5], (dim,), jnp.float32, -scale, scale)
    g1 = jnp.ones((dim,), jnp.float32)
    be1 = jnp.zeros((dim,), jnp.float32)
    g2 = jnp.ones((dim,), jnp.float32)
    be2 = jnp.zeros((dim,), jnp.float32)
    return (w1, b1, g1, be1, w2, b2, g2, be2, w3, b3)


def local_mlp_reference(x, params):
    """Pure-JAX reference mirroring the PyTorch math and the kernel's precision
    policy (bf16 MXU operands, f32 LayerNorm / GELU / residual)."""
    w1, b1, g1, be1, w2, b2, g2, be2, w3, b3 = params
    B, C, H, W = x.shape
    c = jnp.transpose(x, (0, 2, 3, 1)).reshape(-1, C).astype(jnp.float32)

    def ln(h, g, b):
        mu = jnp.mean(h, axis=-1, keepdims=True)
        d = h - mu
        var = jnp.mean(d * d, axis=-1, keepdims=True)
        return d * jax.lax.rsqrt(var + EPS) * g + b

    def mm(h, w):
        return jnp.dot(h.astype(jnp.bfloat16), w.astype(jnp.bfloat16).T,
                       preferred_element_type=jnp.float32)

    h = mm(c, w1) + b1
    h = ln(h, g1, be1)
    h = _gelu_exact(h)
    h = mm(h, w2) + b2
    h = ln(h, g2, be2)
    h = h + c
    out = mm(h, w3) + b3
    out = out.reshape(B, H, W, C)
    return jnp.transpose(out, (0, 3, 1, 2)).astype(x.dtype)


if __name__ == "__main__":
    key = jax.random.PRNGKey(0)
    k_x, k_p = jax.random.split(key)

    B, C, H, W = 2, 4, 16, 16
    patch_size = 2
    x = jax.random.normal(k_x, (B, C, H, W), jnp.float32)
    params = init_params(k_p, C)

    out = local_mlp(x, params, patch_size=patch_size)
    out = jax.block_until_ready(out)

    ref = local_mlp_reference(x, params)
    assert out.shape == (B, C, H, W)
    max_err = float(jnp.max(jnp.abs(out - ref)))
    assert jnp.allclose(out, ref, atol=3e-3, rtol=3e-3), f"mismatch vs reference: {max_err}"

    print("KERNEL_OK")
</pallas_src>

<mosaic_0001>
module attributes {stable_mosaic.version = 11 : i64} {
  func.func @local_mlp_kernel(%arg0: i32, %arg1: i32, %arg2: memref<1x4x256xf32, #tpu.memory_space<vmem>>, %arg3: memref<4x4xbf16, #tpu.memory_space<vmem>>, %arg4: memref<4x4xbf16, #tpu.memory_space<vmem>>, %arg5: memref<4x4xbf16, #tpu.memory_space<vmem>>, %arg6: memref<4x8xf32, #tpu.memory_space<vmem>>, %arg7: memref<1x4x256xf32, #tpu.memory_space<vmem>>) attributes {dimension_semantics = [#tpu.dimension_semantics<parallel>, #tpu.dimension_semantics<parallel>], iteration_bounds = array<i64: 2, 1>, scalar_prefetch = 0 : i64, scratch_operands = 0 : i64, tpu.core_type = #tpu.core_type<tc>, window_params = [{transform_indices = @transform_0, window_bounds = array<i64: 1, 4, 256>}, {pipeline_mode = #tpu.pipeline_mode<synchronous>, transform_indices = @transform_1, window_bounds = array<i64: 4, 4>}, {pipeline_mode = #tpu.pipeline_mode<synchronous>, transform_indices = @transform_2, window_bounds = array<i64: 4, 4>}, {pipeline_mode = #tpu.pipeline_mode<synchronous>, transform_indices = @transform_3, window_bounds = array<i64: 4, 4>}, {pipeline_mode = #tpu.pipeline_mode<synchronous>, transform_indices = @transform_4, window_bounds = array<i64: 4, 8>}, {transform_indices = @transform_5, window_bounds = array<i64: 1, 4, 256>}]} {
    %c0 = arith.constant 0 : index
    %c0_0 = arith.constant 0 : index
    %c0_1 = arith.constant 0 : index
    %0 = vector.load %arg2[%c0, %c0_0, %c0_1] : memref<1x4x256xf32, #tpu.memory_space<vmem>>, vector<1x4x256xf32>
    %1 = vector.shape_cast %0 : vector<1x4x256xf32> to vector<4x256xf32>
    %2 = arith.truncf %1 : vector<4x256xf32> to vector<4x256xbf16>
    %c0_2 = arith.constant 0 : index
    %c0_3 = arith.constant 0 : index
    %3 = vector.load %arg6[%c0_2, %c0_3] : memref<4x8xf32, #tpu.memory_space<vmem>>, vector<4x8xf32>
    %4 = vector.extract_strided_slice %3 {offsets = [0, 0], sizes = [4, 1], strides = [1, 1]} : vector<4x8xf32> to vector<4x1xf32>
    %5 = vector.extract_strided_slice %3 {offsets = [0, 1], sizes = [4, 1], strides = [1, 1]} : vector<4x8xf32> to vector<4x1xf32>
    %6 = vector.extract_strided_slice %3 {offsets = [0, 2], sizes = [4, 1], strides = [1, 1]} : vector<4x8xf32> to vector<4x1xf32>
    %7 = vector.extract_strided_slice %3 {offsets = [0, 3], sizes = [4, 1], strides = [1, 1]} : vector<4x8xf32> to vector<4x1xf32>
    %8 = vector.extract_strided_slice %3 {offsets = [0, 4], sizes = [4, 1], strides = [1, 1]} : vector<4x8xf32> to vector<4x1xf32>
    %9 = vector.extract_strided_slice %3 {offsets = [0, 5], sizes = [4, 1], strides = [1, 1]} : vector<4x8xf32> to vector<4x1xf32>
    %10 = vector.extract_strided_slice %3 {offsets = [0, 6], sizes = [4, 1], strides = [1, 1]} : vector<4x8xf32> to vector<4x1xf32>
    %c0_4 = arith.constant 0 : index
    %c0_5 = arith.constant 0 : index
    %11 = vector.load %arg3[%c0_4, %c0_5] : memref<4x4xbf16, #tpu.memory_space<vmem>>, vector<4x4xbf16>
    %cst = arith.constant dense<0.000000e+00> : vector<4x256xf32>
    %12 = tpu.matmul %11, %2, %cst {dimension_numbers = #tpu.dot_dimension_numbers<[1], [0], [0], [1], [0, 0, 1, 1], [], []>} : vector<4x4xbf16>, vector<4x256xbf16>, vector<4x256xf32> -> vector<4x256xf32>
    %13 = vector.broadcast %4 : vector<4x1xf32> to vector<4x256xf32>
    %14 = arith.addf %12, %13 : vector<4x256xf32>
    %cst_6 = arith.constant dense<0.000000e+00> : vector<256xf32>
    %15 = vector.multi_reduction <add>, %14, %cst_6 [0] : vector<4x256xf32> to vector<256xf32>
    %16 = vector.shape_cast %15 : vector<256xf32> to vector<1x256xf32>
    %cst_7 = arith.constant 4.000000e+00 : f32
    %17 = vector.broadcast %cst_7 : f32 to vector<1x256xf32>
    %18 = arith.divf %16, %17 : vector<1x256xf32>
    %19 = vector.broadcast %18 : vector<1x256xf32> to vector<4x256xf32>
    %20 = arith.subf %14, %19 : vector<4x256xf32>
    %21 = arith.mulf %20, %20 : vector<4x256xf32>
    %cst_8 = arith.constant dense<0.000000e+00> : vector<256xf32>
    %22 = vector.multi_reduction <add>, %21, %cst_8 [0] : vector<4x256xf32> to vector<256xf32>
    %23 = vector.shape_cast %22 : vector<256xf32> to vector<1x256xf32>
    %cst_9 = arith.constant 4.000000e+00 : f32
    %24 = vector.broadcast %cst_9 : f32 to vector<1x256xf32>
    %25 = arith.divf %23, %24 : vector<1x256xf32>
    %cst_10 = arith.constant 9.99999974E-6 : f32
    %26 = vector.broadcast %cst_10 : f32 to vector<1x256xf32>
    %27 = arith.addf %25, %26 : vector<1x256xf32>
    %28 = math.rsqrt %27 : vector<1x256xf32>
    %29 = vector.broadcast %28 : vector<1x256xf32> to vector<4x256xf32>
    %30 = arith.mulf %20, %29 : vector<4x256xf32>
    %31 = vector.broadcast %5 : vector<4x1xf32> to vector<4x256xf32>
    %32 = arith.mulf %30, %31 : vector<4x256xf32>
    %33 = vector.broadcast %6 : vector<4x1xf32> to vector<4x256xf32>
    %34 = arith.addf %32, %33 : vector<4x256xf32>
    %cst_11 = arith.constant 5.000000e-01 : f32
    %35 = vector.broadcast %cst_11 : f32 to vector<4x256xf32>
    %36 = arith.mulf %35, %34 : vector<4x256xf32>
    %cst_12 = arith.constant 0.707106769 : f32
    %37 = vector.broadcast %cst_12 : f32 to vector<4x256xf32>
    %38 = arith.mulf %34, %37 : vector<4x256xf32>
    %39 = math.erf %38 : vector<4x256xf32>
    %cst_13 = arith.constant 1.000000e+00 : f32
    %40 = vector.broadcast %cst_13 : f32 to vector<4x256xf32>
    %41 = arith.addf %40, %39 : vector<4x256xf32>
    %42 = arith.mulf %36, %41 : vector<4x256xf32>
    %c0_14 = arith.constant 0 : index
    %c0_15 = arith.constant 0 : index
    %43 = vector.load %arg4[%c0_14, %c0_15] : memref<4x4xbf16, #tpu.memory_space<vmem>>, vector<4x4xbf16>
    %44 = arith.truncf %42 : vector<4x256xf32> to vector<4x256xbf16>
    %cst_16 = arith.constant dense<0.000000e+00> : vector<4x256xf32>
    %45 = tpu.matmul %43, %44, %cst_16 {dimension_numbers = #tpu.dot_dimension_numbers<[1], [0], [0], [1], [0, 0, 1, 1], [], []>} : vector<4x4xbf16>, vector<4x256xbf16>, vector<4x256xf32> -> vector<4x256xf32>
    %46 = vector.broadcast %7 : vector<4x1xf32> to vector<4x256xf32>
    %47 = arith.addf %45, %46 : vector<4x256xf32>
    %cst_17 = arith.constant dense<0.000000e+00> : vector<256xf32>
    %48 = vector.multi_reduction <add>, %47, %cst_17 [0] : vector<4x256xf32> to vector<256xf32>
    %49 = vector.shape_cast %48 : vector<256xf32> to vector<1x256xf32>
    %cst_18 = arith.constant 4.000000e+00 : f32
    %50 = vector.broadcast %cst_18 : f32 to vector<1x256xf32>
    %51 = arith.divf %49, %50 : vector<1x256xf32>
    %52 = vector.broadcast %51 : vector<1x256xf32> to vector<4x256xf32>
    %53 = arith.subf %47, %52 : vector<4x256xf32>
    %54 = arith.mulf %53, %53 : vector<4x256xf32>
    %cst_19 = arith.constant dense<0.000000e+00> : vector<256xf32>
    %55 = vector.multi_reduction <add>, %54, %cst_19 [0] : vector<4x256xf32> to vector<256xf32>
    %56 = vector.shape_cast %55 : vector<256xf32> to vector<1x256xf32>
    %cst_20 = arith.constant 4.000000e+00 : f32
    %57 = vector.broadcast %cst_20 : f32 to vector<1x256xf32>
    %58 = arith.divf %56, %57 : vector<1x256xf32>
    %cst_21 = arith.constant 9.99999974E-6 : f32
    %59 = vector.broadcast %cst_21 : f32 to vector<1x256xf32>
    %60 = arith.addf %58, %59 : vector<1x256xf32>
    %61 = math.rsqrt %60 : vector<1x256xf32>
    %62 = vector.broadcast %61 : vector<1x256xf32> to vector<4x256xf32>
    %63 = arith.mulf %53, %62 : vector<4x256xf32>
    %64 = vector.broadcast %8 : vector<4x1xf32> to vector<4x256xf32>
    %65 = arith.mulf %63, %64 : vector<4x256xf32>
    %66 = vector.broadcast %9 : vector<4x1xf32> to vector<4x256xf32>
    %67 = arith.addf %65, %66 : vector<4x256xf32>
    %68 = arith.addf %67, %1 : vector<4x256xf32>
    %c0_22 = arith.constant 0 : index
    %c0_23 = arith.constant 0 : index
    %69 = vector.load %arg5[%c0_22, %c0_23] : memref<4x4xbf16, #tpu.memory_space<vmem>>, vector<4x4xbf16>
    %70 = arith.truncf %68 : vector<4x256xf32> to vector<4x256xbf16>
    %cst_24 = arith.constant dense<0.000000e+00> : vector<4x256xf32>
    %71 = tpu.matmul %69, %70, %cst_24 {dimension_numbers = #tpu.dot_dimension_numbers<[1], [0], [0], [1], [0, 0, 1, 1], [], []>} : vector<4x4xbf16>, vector<4x256xbf16>, vector<4x256xf32> -> vector<4x256xf32>
    %72 = vector.broadcast %10 : vector<4x1xf32> to vector<4x256xf32>
    %73 = arith.addf %71, %72 : vector<4x256xf32>
    %c0_25 = arith.constant 0 : index
    %c0_26 = arith.constant 0 : index
    %c0_27 = arith.constant 0 : index
    %74 = vector.load %arg7[%c0_25, %c0_26, %c0_27] : memref<1x4x256xf32, #tpu.memory_space<vmem>>, vector<1x4x256xf32>
    %75 = vector.shape_cast %74 : vector<1x4x256xf32> to vector<4x256xf32>
    %76 = vector.shape_cast %73 : vector<4x256xf32> to vector<1x4x256xf32>
    tpu.vector_store %arg7[%c0_25, %c0_26, %c0_27], %76 {strides = array<i32>} : memref<1x4x256xf32, #tpu.memory_space<vmem>>, vector<1x4x256xf32>,
    return
  }
  func.func @transform_0(%arg0: i32, %arg1: i32) -> (i32, i32, i32) {
    %c0_i32 = arith.constant 0 : i32
    %c0_i32_0 = arith.constant 0 : i32
    return %arg0, %c0_i32, %arg1 : i32, i32, i32
  }
  func.func @transform_1(%arg0: i32, %arg1: i32) -> (i32, i32) {
    %c0_i32 = arith.constant 0 : i32
    %c0_i32_0 = arith.constant 0 : i32
    %c0_i32_1 = arith.constant 0 : i32
    return %c0_i32, %c0_i32_0 : i32, i32
  }
  func.func @transform_2(%arg0: i32, %arg1: i32) -> (i32, i32) {
    %c0_i32 = arith.constant 0 : i32
    %c0_i32_0 = arith.constant 0 : i32
    %c0_i32_1 = arith.constant 0 : i32
    return %c0_i32, %c0_i32_0 : i32, i32
  }
  func.func @transform_3(%arg0: i32, %arg1: i32) -> (i32, i32) {
    %c0_i32 = arith.constant 0 : i32
    %c0_i32_0 = arith.constant 0 : i32
    %c0_i32_1 = arith.constant 0 : i32
    return %c0_i32, %c0_i32_0 : i32, i32
  }
  func.func @transform_4(%arg0: i32, %arg1: i32) -> (i32, i32) {
    %c0_i32 = arith.constant 0 : i32
    %c0_i32_0 = arith.constant 0 : i32
    %c0_i32_1 = arith.constant 0 : i32
    return %c0_i32, %c0_i32_0 : i32, i32
  }
  func.func @transform_5(%arg0: i32, %arg1: i32) -> (i32, i32, i32) {
    %c0_i32 = arith.constant 0 : i32
    %c0_i32_0 = arith.constant 0 : i32
    return %arg0, %c0_i32, %arg1 : i32, i32, i32
  }
}

</mosaic_0001>

<bundles_post_ra>
// kernel: local_mlp.1
= control target key start
LH: loop header
LB: loop body
LE: loop exit
PB: predicated region body
PF: predicated region fallthrough
CT: control target
= control target key end

     0   :  { %s790_s18 = smov 0   ;;  %s792_s19 = smov 0   ;;  %s880_s0 = inlined_call_operand.vmem [shape: f32[2,4,256], index: 0, kind: input, shape index: {}]   ;;  %s881_s1 = inlined_call_operand.vmem [shape: bf16[4,4], index: 1, kind: input, shape index: {}]   ;;  %s882_s2 = inlined_call_operand.vmem [shape: bf16[4,4], index: 2, kind: input, shape index: {}]   ;;  %s883_s3 = inlined_call_operand.vmem [shape: bf16[4,4], index: 3, kind: input, shape index: {}]   ;;  %s884_s4 = inlined_call_operand.vmem [shape: f32[4,8], index: 4, kind: input, shape index: {}]   ;;  %s885_s5 = inlined_call_operand.vmem [shape: f32[2,4,256], index: 5, kind: output, shape index: {}]  }
   0x1   :  { %s794_s20 = smov 0  }
   0x2 LB: > { %s27_s21 = sadd.s32 1, %s747_s19  ;;  %p662_p0 = scmp.ge.s32.totalorder %s751_s20, 1  ;;  %s751_s20 = sphi %s794_s20, %s15_s20   ;;  %s747_s19 = sphi %s792_s19, %s887_s19   ;;  %s743_s18 = sphi %s790_s18, %s886_s18  }
   0x3   : > { %p29_p1 = scmp.ge.s32.totalorder %s27_s21, 2  ;;  %p208_p2 = scmp.lt.s32.totalorder %s751_s20, 3 }
   0x5   : > { %s889_s21 = smov (%p29_p1, %s27_s21), 0  ;;  %p209_p3 = pnand %p662_p0, %p208_p2 }
   0x6   : > { %p245_p4 = scmp.lt.s32.totalorder (!%p209_p3), %s743_s18, 1 }
   0x7   : > { %212 = sbr.rel (%p209_p3) target bundleno = 764 (0x2fc), region = 40 }
   0xc   : > { %v753_v0 = vmov 0   ;;  %v811_v1 = vld [vmem:[%s884_s4] sm:$0xf]  ;;  %s891_s18 = smov (!%p245_p4, %s743_s18), 1  ;;  %v754_v2 = vmov 2   ;;  %vm282_vm0 = vcmask 1041408  }
   0xd   : > { %321 = vmatprep.mubr.bf16.mxu0 %v753_v0  ;;  %708 = vset.pattern.permute.xlu0 %v753_v0  ;;  %s675_s24 = sshll.u32 %s891_s18, 3  ;;  %v755_v4 = vmov 1   ;;  %v272_v9 = vld [vmem:[%s881_s1] sm:$0x3]  ;;  %vm278_vm1 = vcmask 31744   ;;  %v756_v10 = vmov 3  }
   0xe   : > { %275 = vperm.xlu0 %708, %v811_v1   ;;  %710 = vset.pattern.permute.xlu1 %v754_v2  ;;  %s252_s27 = scalar_lea.vmem %s880_s0, %s675_s24  ;;  %v757_v11 = vmov 5   ;;  %v758_v12 = vmov 4   ;;  %vm330_vm2 = vcmask 1043456   ;;  %s262_s11 = scalar_lea.vmem %s885_s5, %s675_s24 }
   0xf   : > { %381 = vperm.xlu1 %710, %v811_v1   ;;  %444 = vmatprep.mubr.bf16.mxu1 %v753_v0  ;;  %v823_v3 = vld [vmem:[%s252_s27] sm:$0xff] }
  0x10   : > { %v827_v5 = vcombine.high %v823_v3, %v823_v3  ;;  %v269_v6 = vpack.c.bf16 %v823_v3, %v823_v3 }
  0x12   : > { %709 = vset.pattern.permute.xlu0 %v755_v4  ;;  %v270_v7 = vpack.c.bf16 %v827_v5, %v827_v5  ;;  %v284_v8 = vsel %vm282_vm0, %v269_v6, 0 }
  0x13   : > { %375 = vperm.xlu0 %709, %v811_v1   ;;  %711 = vset.pattern.permute.xlu1 %v756_v10 }
  0x14   : > { %667 = vmatprep.subr.msk.bf16.mxu0 %vm282_vm0, %v270_v7  ;;  %400 = vperm.xlu1 %711, %v811_v1  }
  0x15   : > { %304 = vmatpush1.bf16.msra.mxu0 %v284_v8 }
  0x17   : > { %713 = vset.pattern.permute.xlu0 %v757_v11 }
  0x18   : > { %668 = vmatmul.mubr.msk.bf16.vlgmr.msra.gmra.mxu0 %vm278_vm1, %v272_v9  ;;  %502 = vperm.xlu0 %713, %v811_v1  }
  0x19   : > { %557 = vmatprep.mubr.bf16.mxu0 %v753_v0  ;;  %712 = vset.pattern.permute.xlu1 %v758_v12 }
  0x1a   : > { %496 = vperm.xlu1 %712, %v811_v1  }
  0x89   : > { %v276_v13 = vpop.permute.xlu0 %275 }
  0x8a   : > { %v382_v62 = vpop.permute.xlu1 %381 }
  0x8e   : > { %v376_v59 = vpop.permute.xlu0 %375 }
  0xd8   : > { %v323_v14 = vpop.f32.mrf.mxu0 }
  0xd9   : > { %v324_v15 = vadd.f32 %v323_v14, %v276_v13 }
  0xda   : > { %v325_v16 = vpop.f32.mrf.mxu0 }
  0xdb   : > { %v331_v17 = vsel %vm330_vm2, %v324_v15, 0.0  ;;  %v326_v18 = vadd.f32 %v325_v16, %v276_v13 }
  0xdc   : > { %v332_v19 = vrot.slane %v331_v17, 4  ;;  %v327_v20 = vpop.f32.mrf.mxu0 }
  0xdd   : > { %v338_v21 = vsel %vm330_vm2, %v326_v18, 0.0  ;;  %v396_v20 = vld [vmem:[%s882_s2] sm:$0x3] }
  0xde   : > { %v333_v22 = vadd.f32 %v332_v19, %v331_v17  ;;  %v339_v23 = vrot.slane %v338_v21, 4  ;;  %v328_v24 = vpop.f32.mrf.mxu0 }
  0xe0   : > { %v334_v25 = vrot.slane %v333_v22, 2  ;;  %v340_v26 = vadd.f32 %v339_v23, %v338_v21  ;;  %v759_v21 = vmov 6  }
  0xe1   : > { %714 = vset.pattern.permute.xlu1 %v759_v21  ;;  %715 = vset.pattern.permute.xlu0 %v759_v21 }
  0xe2   : > { %v335_v27 = vadd.f32 %v334_v25, %v333_v22  ;;  %v341_v28 = vrot.slane %v340_v26, 2  ;;  %513 = vperm.xlu1 %714, %v811_v1   ;;  %v401_v22 = vpop.permute.xlu1 %400 }
  0xe4   : > { %v336_v29 = vrot.slane %v335_v27, 1  ;;  %v342_v30 = vadd.f32 %v341_v28, %v340_v26 }
  0xe6   : > { %v337_v31 = vadd.f32 %v336_v29, %v335_v27  ;;  %v343_v32 = vrot.slane %v342_v30, 1 }
  0xe8   : > { %v346_v33 = vmul.f32 0.25, %v337_v31  ;;  %v344_v34 = vadd.f32 %v343_v32, %v342_v30 }
  0xea   : > { %v348_v35 = vsub.f32 %v324_v15, %v346_v33  ;;  %v347_v36 = vmul.f32 0.25, %v344_v34 }
  0xec   : > { %v350_v37 = vmul.f32 %v348_v35, %v348_v35  ;;  %v349_v38 = vsub.f32 %v326_v18, %v347_v36 }
  0xee   : > { %v352_v39 = vsel %vm330_vm2, %v350_v37, 0.0  ;;  %v351_v40 = vmul.f32 %v349_v38, %v349_v38 }
  0xef   : > { %v353_v41 = vrot.slane %v352_v39, 4 }
  0xf0   : > { %v359_v42 = vsel %vm330_vm2, %v351_v40, 0.0 }
  0xf1   : > { %v354_v43 = vadd.f32 %v353_v41, %v352_v39  ;;  %v360_v44 = vrot.slane %v359_v42, 4 }
  0xf3   : > { %v355_v45 = vrot.slane %v354_v43, 2  ;;  %v361_v46 = vadd.f32 %v360_v44, %v359_v42 }
  0xf5   : > { %v356_v47 = vadd.f32 %v355_v45, %v354_v43  ;;  %v362_v48 = vrot.slane %v361_v46, 2 }
  0xf7   : > { %v357_v49 = vrot.slane %v356_v47, 1  ;;  %v363_v50 = vadd.f32 %v362_v48, %v361_v46 }
  0xf9   : > { %v358_v51 = vadd.f32 %v357_v49, %v356_v47  ;;  %v364_v52 = vrot.slane %v363_v50, 1 }
  0xfb   : > { %v366_v53 = vmul.f32 0.25, %v358_v51  ;;  %v365_v54 = vadd.f32 %v364_v52, %v363_v50 }
  0xfd   : > { %v368_v55 = vadd.f32 1e-05, %v366_v53  ;;  %v367_v56 = vmul.f32 0.25, %v365_v54 }
  0xff   : > { %717 = vrsqrt.f32 %v368_v55  ;;  %v369_v57 = vadd.f32 1e-05, %v367_v56 }
 0x101   : > { %719 = vrsqrt.f32 %v369_v57 }
 0x10c   : > { %v718_v58 = vpop.eup %717 }
 0x10d   : > { %v372_v60 = vmul.f32 %v718_v58, %v348_v35 }
 0x10e   : > { %v720_v61 = vpop.eup %719 }
 0x10f   : > { %v373_v63 = vmul.f32 %v720_v61, %v349_v38  ;;  %v378_v0 = vmul.f32 %v376_v59, %v372_v60 }
 0x111   : > { %v379_v2 = vmul.f32 %v376_v59, %v373_v63  ;;  %v384_v4 = vadd.f32 %v382_v62, %v378_v0 }
 0x113   : > { %v385_v6 = vadd.f32 %v382_v62, %v379_v2  ;;  %v388_v7 = vmul.f32 0.70710677, %v384_v4  ;;  %v386_v10 = vmul.f32 0.5, %v384_v4 }
 0x115   : > { %v389_v8 = vmul.f32 0.70710677, %v385_v6  ;;  %721 = verf.f32 %v388_v7  ;;  %v387_v13 = vmul.f32 0.5, %v385_v6  ;;  %v497_v6 = vpop.permute.xlu1 %496 }
 0x117   : > { %723 = verf.f32 %v389_v8 }
 0x122   : > { %v722_v9 = vpop.eup %721 }
 0x123   : > { %v392_v11 = vadd.f32 1.0, %v722_v9  ;;  %v503_v9 = vpop.permute.xlu0 %502 }
 0x124   : > { %v724_v12 = vpop.eup %723 }
 0x125   : > { %v393_v14 = vadd.f32 1.0, %v724_v12  ;;  %v394_v15 = vmul.f32 %v392_v11, %v386_v10 }
 0x127   : > { %v395_v16 = vmul.f32 %v393_v14, %v387_v13  ;;  %v397_v17 = vpack.c.bf16 %v394_v15, %v394_v15 }
 0x129   : > { %v398_v18 = vpack.c.bf16 %v395_v16, %v395_v16  ;;  %v407_v19 = vsel %vm282_vm0, %v397_v17, 0 }
 0x12b   : > { %669 = vmatprep.subr.msk.bf16.mxu1 %vm282_vm0, %v398_v18 }
 0x12c   : > { %427 = vmatpush1.bf16.msra.mxu1 %v407_v19 }
 0x12f   : > { %670 = vmatmul.mubr.msk.bf16.vlgmr.msra.gmra.mxu1 %vm278_vm1, %v396_v20  ;;  %v509_v20 = vld [vmem:[%s883_s3] sm:$0x3] }
 0x1ef   : > { %v446_v23 = vpop.f32.mrf.mxu1 }
 0x1f0   : > { %v447_v24 = vadd.f32 %v446_v23, %v401_v22 }
 0x1f1   : > { %v448_v25 = vpop.f32.mrf.mxu1 }
 0x1f2   : > { %v453_v26 = vsel %vm330_vm2, %v447_v24, 0.0  ;;  %v449_v27 = vadd.f32 %v448_v25, %v401_v22  ;;  %v514_v22 = vpop.permute.xlu1 %513 }
 0x1f3   : > { %v454_v28 = vrot.slane %v453_v26, 4  ;;  %v450_v29 = vpop.f32.mrf.mxu1 }
 0x1f4   : > { %v460_v30 = vsel %vm330_vm2, %v449_v27, 0.0 }
 0x1f5   : > { %v455_v31 = vadd.f32 %v454_v28, %v453_v26  ;;  %v461_v32 = vrot.slane %v460_v30, 4  ;;  %v451_v33 = vpop.f32.mrf.mxu1 }
 0x1f7   : > { %v456_v34 = vrot.slane %v455_v31, 2  ;;  %v462_v35 = vadd.f32 %v461_v32, %v460_v30 }
 0x1f9   : > { %v457_v36 = vadd.f32 %v456_v34, %v455_v31  ;;  %v463_v37 = vrot.slane %v462_v35, 2 }
 0x1fb   : > { %v458_v38 = vrot.slane %v457_v36, 1  ;;  %v464_v1 = vadd.f32 %v463_v37, %v462_v35 }
 0x1fd   : > { %v459_v39 = vadd.f32 %v458_v38, %v457_v36  ;;  %v465_v40 = vrot.slane %v464_v1, 1 }
 0x1ff   : > { %v467_v41 = vmul.f32 0.25, %v459_v39  ;;  %v466_v42 = vadd.f32 %v465_v40, %v464_v1 }
 0x201   : > { %v469_v43 = vsub.f32 %v447_v24, %v467_v41  ;;  %v468_v44 = vmul.f32 0.25, %v466_v42 }
 0x203   : > { %v471_v45 = vmul.f32 %v469_v43, %v469_v43  ;;  %v470_v46 = vsub.f32 %v449_v27, %v468_v44 }
 0x205   : > { %v473_v47 = vsel %vm330_vm2, %v471_v45, 0.0  ;;  %v472_v48 = vmul.f32 %v470_v46, %v470_v46 }
 0x206   : > { %v474_v49 = vrot.slane %v473_v47, 4 }
 0x207   : > { %v480_v50 = vsel %vm330_vm2, %v472_v48, 0.0 }
 0x208   : > { %v475_v51 = vadd.f32 %v474_v49, %v473_v47  ;;  %v481_v52 = vrot.slane %v480_v50, 4 }
 0x20a   : > { %v476_v53 = vrot.slane %v475_v51, 2  ;;  %v482_v54 = vadd.f32 %v481_v52, %v480_v50 }
 0x20c   : > { %v477_v55 = vadd.f32 %v476_v53, %v475_v51  ;;  %v483_v56 = vrot.slane %v482_v54, 2 }
 0x20e   : > { %v478_v57 = vrot.slane %v477_v55, 1  ;;  %v484_v58 = vadd.f32 %v483_v56, %v482_v54 }
 0x210   : > { %v479_v59 = vadd.f32 %v478_v57, %v477_v55  ;;  %v485_v60 = vrot.slane %v484_v58, 1 }
 0x212   : > { %v487_v61 = vmul.f32 0.25, %v479_v59  ;;  %v486_v62 = vadd.f32 %v485_v60, %v484_v58 }
 0x214   : > { %v489_v63 = vadd.f32 1e-05, %v487_v61  ;;  %v488_v0 = vmul.f32 0.25, %v486_v62 }
 0x216   : > { %725 = vrsqrt.f32 %v489_v63  ;;  %v490_v2 = vadd.f32 1e-05, %v488_v0 }
 0x218   : > { %727 = vrsqrt.f32 %v490_v2 }
 0x223   : > { %v726_v4 = vpop.eup %725 }
 0x224   : > { %v493_v7 = vmul.f32 %v726_v4, %v469_v43 }
 0x225   : > { %v728_v8 = vpop.eup %727 }
 0x226   : > { %v494_v10 = vmul.f32 %v728_v8, %v470_v46  ;;  %v499_v11 = vmul.f32 %v497_v6, %v493_v7 }
 0x228   : > { %v500_v12 = vmul.f32 %v497_v6, %v494_v10  ;;  %v505_v13 = vadd.f32 %v503_v9, %v499_v11 }
 0x22a   : > { %v506_v14 = vadd.f32 %v503_v9, %v500_v12  ;;  %v507_v15 = vadd.f32 %v505_v13, %v823_v3 }
 0x22c   : > { %v508_v16 = vadd.f32 %v506_v14, %v827_v5  ;;  %v510_v17 = vpack.c.bf16 %v507_v15, %v507_v15 }
 0x22e   : > { %v511_v18 = vpack.c.bf16 %v508_v16, %v508_v16  ;;  %v520_v19 = vsel %vm282_vm0, %v510_v17, 0 }
 0x230   : > { %671 = vmatprep.subr.msk.bf16.mxu0 %vm282_vm0, %v511_v18 }
 0x231   : > { %540 = vmatpush1.bf16.msra.mxu0 %v520_v19 }
 0x234   : > { %672 = vmatmul.mubr.msk.bf16.vlgmr.msra.gmra.mxu0 %vm278_vm1, %v509_v20 }
 0x2f4   : > { %v559_v21 = vpop.f32.mrf.mxu0 }
 0x2f5   : > { %v560_v24 = vadd.f32 %v559_v21, %v514_v22 }
 0x2f6   : > { %v561_v23 = vpop.f32.mrf.mxu0 }
 0x2f7   : > { %v562_v3 = vadd.f32 %v561_v23, %v514_v22 }
 0x2f8   : > { %v563_v25 = vpop.f32.mrf.mxu0 }
 0x2f9   : > { %v568_v5 = vcombine.low %v560_v24, %v562_v3 }
 0x2fa   : > { %v564_v26 = vpop.f32.mrf.mxu0 }
 0x2fb   : > { %570 = vst [vmem:[%s262_s11] sm:$0xff] %v568_v5 }
 0x2fc PF: > { %s15_s20 = sadd.s32 1, %s751_s20   ;;  %s886_s18 = smov %s747_s19 }
 0x2fd   : > { %p12_p5 = scmp.ge.s32.totalorder %s15_s20, 4   ;;  %s887_s19 = smov %s889_s21 }
 0x2ff   :  { %14 = sbr.rel (!%p12_p5) target bundleno = 2 (0x2), region = 70 }

</bundles_post_ra>
